<compile_context>
chip_gen: v6e
topology: v6e:2x2x1
jax: 0.10.0
libtpu: 0.0.40
codegen_flags: <defaults>
</compile_context>

<pallas_src>
import jax
import jax.numpy as jnp
from jax import lax
from jax.experimental import pallas as pl
from jax.experimental.pallas import tpu as pltpu

EPS = 1e-5                      # torch.nn.BatchNorm1d default
VMEM_BUDGET = 40 << 20          # plan target; stays under v7x 64 MiB physical


# ---------------------------------------------------------------------------
# Kernels
# ---------------------------------------------------------------------------
def _bn_epilogue(y, gb):
    """Training-mode BatchNorm1d over the batch axis of a resident f32 tile."""
    gamma = gb[0:1, :]                                   # (1, tn)
    beta = gb[1:2, :]                                    # (1, tn)
    inv_b = jnp.float32(1.0 / y.shape[0])
    mean = jnp.sum(y, axis=0, keepdims=True) * inv_b     # (1, tn)
    d = y - mean
    # Two-pass variance: numerically safe vs E[y^2] - E[y]^2 cancellation.
    var = jnp.sum(d * d, axis=0, keepdims=True) * inv_b
    scale = gamma * lax.rsqrt(var + jnp.float32(EPS))    # EUP rsqrt
    return d * scale + beta


def _bnlinear_single_pass_kernel(x_ref, w_ref, gb_ref, o_ref):
    # x: (B, d_in), w: (tn, d_in) -> y: (B, tn) in f32 (MXU, f32 accumulate).
    y = lax.dot_general(
        x_ref[...], w_ref[...],
        dimension_numbers=(((1,), (1,)), ((), ())),
        preferred_element_type=jnp.float32)
    o_ref[...] = _bn_epilogue(y, gb_ref[...]).astype(o_ref.dtype)


def _bnlinear_tiled_k_kernel(x_ref, w_ref, gb_ref, o_ref, acc_ref):
    k = pl.program_id(1)

    @pl.when(k == 0)
    def _():
        acc_ref[...] = jnp.zeros_like(acc_ref)

    acc_ref[...] += lax.dot_general(
        x_ref[...], w_ref[...],
        dimension_numbers=(((1,), (1,)), ((), ())),
        preferred_element_type=jnp.float32)

    @pl.when(k == pl.num_programs(1) - 1)
    def _():
        o_ref[...] = _bn_epilogue(acc_ref[...], gb_ref[...]).astype(o_ref.dtype)


# ---------------------------------------------------------------------------
# Tile planning
# ---------------------------------------------------------------------------
def _balance_tn(d_out, fitting):
    """Prefer the largest fitting tn, but favor an even n-tile count (v7x 2-TC
    load balance) when that costs at most a 2x smaller tile."""
    best = fitting[0]
    n_tiles = d_out // best
    if n_tiles > 1 and n_tiles % 2 == 1:
        for t in fitting:
            if (d_out // t) % 2 == 0 and 2 * t >= best:
                return t
    return best


def _plan_tiles(B, d_in, d_out, isx, isw, iso, budget):
    """Returns (tn, tk, tiled_k, plan_bytes)."""
    def plan_bytes(tn, tk, tiled_k):
        b = 2 * B * tk * isx          # x, double-buffered
        b += 2 * tn * tk * isw        # weight, double-buffered
        b += 2 * 2 * tn * 4           # merged gamma/beta (2, tn) f32
        b += 2 * B * tn * iso         # output, double-buffered
        if tiled_k:
            b += B * tn * 4           # resident f32 accumulator
        return b

    tn_cands = [t for t in (1024, 512, 256, 128) if d_out % t == 0] or [d_out]

    # Preferred path: collapse the K grid axis entirely.
    fitting = [t for t in tn_cands if plan_bytes(t, d_in, False) <= budget]
    if fitting:
        tn = _balance_tn(d_out, fitting)
        return tn, d_in, False, plan_bytes(tn, d_in, False)

    # Fallback: tile the reduction axis with a resident accumulator.
    tk_cands = [t for t in (2048, 1024, 512, 256, 128) if d_in % t == 0] or [d_in]
    for tn in tn_cands:
        for tk in tk_cands:
            if plan_bytes(tn, tk, True) <= budget:
                return tn, tk, True, plan_bytes(tn, tk, True)
    # Last resort: smallest tiles even if over budget.
    tn, tk = tn_cands[-1], tk_cands[-1]
    return tn, tk, True, plan_bytes(tn, tk, True)


# ---------------------------------------------------------------------------
# Wrapper
# ---------------------------------------------------------------------------
def bn_linear(x, weight, bias, gamma, beta, *, vmem_budget_bytes=VMEM_BUDGET):
    """x: (B, d_in); weight: (d_out, d_in); bias/gamma/beta: (d_out,).

    `bias` is accepted for nn.Linear API parity but is a mathematical no-op
    under training-mode BatchNorm (mean subtraction cancels it exactly).
    Inputs are fed to the MXU in their native dtype (pass bf16 x/weight to
    halve HBM traffic in the memory-bound small-B regime).
    """
    del bias
    B, d_in = x.shape
    d_out, d_in_w = weight.shape
    assert d_in == d_in_w

    isx = jnp.dtype(x.dtype).itemsize
    isw = jnp.dtype(weight.dtype).itemsize
    out_dtype = x.dtype
    iso = jnp.dtype(out_dtype).itemsize

    tn, tk, tiled_k, plan = _plan_tiles(B, d_in, d_out, isx, isw, iso,
                                        vmem_budget_bytes)

    # One (2, d_out) operand -> a single small DMA per n tile for BN params.
    gb = jnp.stack([gamma, beta]).astype(jnp.float32)

    cost = pl.CostEstimate(
        flops=2 * B * d_in * d_out,
        transcendentals=d_out,
        bytes_accessed=B * d_in * isx + d_out * d_in * isw
        + 2 * d_out * 4 + B * d_out * iso)

    # Explicit scoped-VMEM limit derived from the plan: at least 32 MiB (lifts
    # v5e's 16 MiB default), at most 56 MiB (fits v7x's 64 MiB physical).
    vmem_limit = min(max(int(plan * 1.25) + (4 << 20), 32 << 20), 56 << 20)

    if not tiled_k:
        # Single weight-streaming pass: no accumulator, no init/finalize.
        return pl.pallas_call(
            _bnlinear_single_pass_kernel,
            out_shape=jax.ShapeDtypeStruct((B, d_out), out_dtype),
            grid_spec=pltpu.PrefetchScalarGridSpec(
                num_scalar_prefetch=0,
                grid=(d_out // tn,),
                in_specs=[
                    pl.BlockSpec((B, d_in), lambda n: (0, 0)),    # x (block idx
                    # unchanged across n -> fetched once by the pipeline)
                    pl.BlockSpec((tn, d_in), lambda n: (n, 0)),   # weight
                    pl.BlockSpec((2, tn), lambda n: (0, n)),      # gamma/beta
                ],
                out_specs=pl.BlockSpec((B, tn), lambda n: (0, n)),
            ),
            compiler_params=pltpu.CompilerParams(
                dimension_semantics=("parallel",),
                vmem_limit_bytes=vmem_limit),
            cost_estimate=cost,
        )(x, weight, gb)

    # Tiled-K fallback: resident f32 accumulator, reduction axis innermost.
    return pl.pallas_call(
        _bnlinear_tiled_k_kernel,
        out_shape=jax.ShapeDtypeStruct((B, d_out), out_dtype),
        grid_spec=pltpu.PrefetchScalarGridSpec(
            num_scalar_prefetch=0,
            grid=(d_out // tn, d_in // tk),
            in_specs=[
                pl.BlockSpec((B, tk), lambda n, k: (0, k)),       # x
                pl.BlockSpec((tn, tk), lambda n, k: (n, k)),      # weight
                pl.BlockSpec((2, tn), lambda n, k: (0, n)),       # gamma/beta
            ],
            out_specs=pl.BlockSpec((B, tn), lambda n, k: (0, n)),
            scratch_shapes=[pltpu.VMEM((B, tn), jnp.float32)],
        ),
        compiler_params=pltpu.CompilerParams(
            dimension_semantics=("parallel", "arbitrary"),
            vmem_limit_bytes=vmem_limit),
        cost_estimate=cost,
    )(x, weight, gb)


# ---------------------------------------------------------------------------
# Reference + tests
# ---------------------------------------------------------------------------
def bn_linear_ref(x, weight, bias, gamma, beta):
    y = x.astype(jnp.float32) @ weight.T.astype(jnp.float32) + bias
    mean = jnp.mean(y, axis=0, keepdims=True)
    var = jnp.mean((y - mean) ** 2, axis=0, keepdims=True)
    return ((y - mean) * lax.rsqrt(var + EPS)) * gamma + beta


if __name__ == "__main__":
    key = jax.random.PRNGKey(0)

    def run_case(B, D_IN, D_OUT, dtype=jnp.float32, tol=1e-4, **kw):
        kx, kw_, kb = jax.random.split(
            jax.random.fold_in(key, 131 * D_IN + D_OUT), 3)
        x = jax.random.normal(kx, (B, D_IN), dtype=jnp.float32).astype(dtype)
        # Torch-like init: uniform(-1/sqrt(D_in), 1/sqrt(D_in)).
        bound = 1.0 / (D_IN ** 0.5)
        weight = jax.random.uniform(
            kw_, (D_OUT, D_IN), jnp.float32, -bound, bound).astype(dtype)
        bias = jax.random.uniform(kb, (D_OUT,), jnp.float32, -bound, bound)
        # BatchNorm1d affine params at torch default init.
        gamma = jnp.ones((D_OUT,), jnp.float32)
        beta = jnp.zeros((D_OUT,), jnp.float32)

        out = jax.block_until_ready(bn_linear(x, weight, bias, gamma, beta, **kw))
        ref = bn_linear_ref(x, weight, bias, gamma, beta)
        assert out.shape == (B, D_OUT)
        err = float(jnp.max(jnp.abs(out.astype(jnp.float32) - ref)))
        assert jnp.allclose(out.astype(jnp.float32), ref, rtol=tol, atol=tol), err

    # Single-pass (K collapsed) path, 3 lane-dense feature tiles of 128.
    run_case(B=8, D_IN=768, D_OUT=384)
    # Tiny shape: full-extent blocks, grid = (1,).
    run_case(B=8, D_IN=32, D_OUT=32)
    # Force the tiled-K accumulator fallback by shrinking the planning budget.
    run_case(B=8, D_IN=768, D_OUT=384, vmem_budget_bytes=256 << 10)
    # bf16 weight/activation streaming (half the HBM bytes); looser tolerance.
    run_case(B=16, D_IN=512, D_OUT=256, dtype=jnp.bfloat16, tol=5e-2)

    print("KERNEL_OK")
</pallas_src>

<mosaic_0001>
module attributes {stable_mosaic.version = 11 : i64} {
  func.func @_bnlinear_single_pass_kernel(%arg0: i32, %arg1: memref<8x768xf32, #tpu.memory_space<vmem>>, %arg2: memref<128x768xf32, #tpu.memory_space<vmem>>, %arg3: memref<2x128xf32, #tpu.memory_space<vmem>>, %arg4: memref<8x128xf32, #tpu.memory_space<vmem>>) attributes {dimension_semantics = [#tpu.dimension_semantics<parallel>], iteration_bounds = array<i64: 3>, scalar_prefetch = 0 : i64, scratch_operands = 0 : i64, tpu.core_type = #tpu.core_type<tc>, window_params = [{pipeline_mode = #tpu.pipeline_mode<synchronous>, transform_indices = @transform_0, window_bounds = array<i64: 8, 768>}, {transform_indices = @transform_1, window_bounds = array<i64: 128, 768>}, {transform_indices = @transform_2, window_bounds = array<i64: 2, 128>}, {transform_indices = @transform_3, window_bounds = array<i64: 8, 128>}]} {
    %c0 = arith.constant 0 : index
    %c0_0 = arith.constant 0 : index
    %0 = vector.load %arg1[%c0, %c0_0] : memref<8x768xf32, #tpu.memory_space<vmem>>, vector<8x768xf32>
    %c0_1 = arith.constant 0 : index
    %c0_2 = arith.constant 0 : index
    %1 = vector.load %arg2[%c0_1, %c0_2] : memref<128x768xf32, #tpu.memory_space<vmem>>, vector<128x768xf32>
    %cst = arith.constant dense<0.000000e+00> : vector<8x128xf32>
    %2 = tpu.matmul %0, %1, %cst {dimension_numbers = #tpu.dot_dimension_numbers<[1], [1], [0], [0], [0, 0, 1, 0], [], []>} : vector<8x768xf32>, vector<128x768xf32>, vector<8x128xf32> -> vector<8x128xf32>
    %c0_3 = arith.constant 0 : index
    %c0_4 = arith.constant 0 : index
    %3 = vector.load %arg3[%c0_3, %c0_4] : memref<2x128xf32, #tpu.memory_space<vmem>>, vector<2x128xf32>
    %4 = vector.extract_strided_slice %3 {offsets = [0, 0], sizes = [1, 128], strides = [1, 1]} : vector<2x128xf32> to vector<1x128xf32>
    %5 = vector.extract_strided_slice %3 {offsets = [1, 0], sizes = [1, 128], strides = [1, 1]} : vector<2x128xf32> to vector<1x128xf32>
    %cst_5 = arith.constant dense<0.000000e+00> : vector<128xf32>
    %6 = vector.multi_reduction <add>, %2, %cst_5 [0] : vector<8x128xf32> to vector<128xf32>
    %7 = vector.shape_cast %6 : vector<128xf32> to vector<1x128xf32>
    %cst_6 = arith.constant 1.250000e-01 : f32
    %8 = vector.broadcast %cst_6 : f32 to vector<1x128xf32>
    %9 = arith.mulf %7, %8 : vector<1x128xf32>
    %10 = vector.broadcast %9 : vector<1x128xf32> to vector<8x128xf32>
    %11 = arith.subf %2, %10 : vector<8x128xf32>
    %12 = arith.mulf %11, %11 : vector<8x128xf32>
    %cst_7 = arith.constant dense<0.000000e+00> : vector<128xf32>
    %13 = vector.multi_reduction <add>, %12, %cst_7 [0] : vector<8x128xf32> to vector<128xf32>
    %14 = vector.shape_cast %13 : vector<128xf32> to vector<1x128xf32>
    %cst_8 = arith.constant 1.250000e-01 : f32
    %15 = vector.broadcast %cst_8 : f32 to vector<1x128xf32>
    %16 = arith.mulf %14, %15 : vector<1x128xf32>
    %cst_9 = arith.constant 9.99999974E-6 : f32
    %17 = vector.broadcast %cst_9 : f32 to vector<1x128xf32>
    %18 = arith.addf %16, %17 : vector<1x128xf32>
    %19 = math.rsqrt %18 : vector<1x128xf32>
    %20 = arith.mulf %4, %19 : vector<1x128xf32>
    %21 = vector.broadcast %20 : vector<1x128xf32> to vector<8x128xf32>
    %22 = arith.mulf %11, %21 : vector<8x128xf32>
    %23 = vector.broadcast %5 : vector<1x128xf32> to vector<8x128xf32>
    %24 = arith.addf %22, %23 : vector<8x128xf32>
    %c0_10 = arith.constant 0 : index
    %c0_11 = arith.constant 0 : index
    %25 = vector.load %arg4[%c0_10, %c0_11] : memref<8x128xf32, #tpu.memory_space<vmem>>, vector<8x128xf32>
    tpu.vector_store %arg4[%c0_10, %c0_11], %24 {strides = array<i32>} : memref<8x128xf32, #tpu.memory_space<vmem>>, vector<8x128xf32>,
    return
  }
  func.func @transform_0(%arg0: i32) -> (i32, i32) {
    %c0_i32 = arith.constant 0 : i32
    %c0_i32_0 = arith.constant 0 : i32
    %c0_i32_1 = arith.constant 0 : i32
    return %c0_i32, %c0_i32_0 : i32, i32
  }
  func.func @transform_1(%arg0: i32) -> (i32, i32) {
    %c0_i32 = arith.constant 0 : i32
    %c0_i32_0 = arith.constant 0 : i32
    return %arg0, %c0_i32 : i32, i32
  }
  func.func @transform_2(%arg0: i32) -> (i32, i32) {
    %c0_i32 = arith.constant 0 : i32
    %c0_i32_0 = arith.constant 0 : i32
    return %c0_i32, %arg0 : i32, i32
  }
  func.func @transform_3(%arg0: i32) -> (i32, i32) {
    %c0_i32 = arith.constant 0 : i32
    %c0_i32_0 = arith.constant 0 : i32
    return %c0_i32, %arg0 : i32, i32
  }
}

</mosaic_0001>

<bundles_post_ra>
// kernel: tpu_custom_call.1
= control target key start
LH: loop header
LB: loop body
LE: loop exit
PB: predicated region body
PF: predicated region fallthrough
CT: control target
= control target key end

     0   :  { %8 = vsyncpa [#allocation3], 0  ;;  %s1269_s0 = inlined_call_operand.hbm [shape: f32[8,768], index: 0, kind: input, shape index: {}]   ;;  %s1270_s1 = inlined_call_operand.hbm [shape: f32[384,768], index: 1, kind: input, shape index: {}]   ;;  %s1271_s2 = inlined_call_operand.hbm [shape: f32[2,384], index: 2, kind: input, shape index: {}]   ;;  %s1272_s3 = inlined_call_operand.hbm [shape: f32[8,384], index: 3, kind: output, shape index: {}]  }
   0x1   :  { %9 = vsyncpa [#allocation6], 0 }
   0x2   :  { %11 = vsyncpa [#allocation6 + $0x1], 0 }
   0x3   :  { %12 = vsyncpa [#allocation4], 0 }
   0x4   :  { %14 = vsyncpa [#allocation4 + $0x1], 0  ;;  %s961_s12 = smov 0   ;;  %s963_s13 = smov 0  }
   0x5   :  { %s965_s14 = smov 0   ;;  %s967_s15 = smov 0  }
   0x6 LB: > { %s982_s16 = sadd.s32 1, %s933_s15   ;;  %s48_s17 = sadd.s32 1, %s929_s14  ;;  %s933_s15 = sphi %s967_s15, %s1294_s15   ;;  %s929_s14 = sphi %s965_s14, %s1293_s14   ;;  %s925_s13 = sphi %s963_s13, %s1292_s13   ;;  %s921_s12 = sphi %s961_s12, %s1291_s12  }
   0x7   : > { %s45_s18 = ssub.s32 %s933_s15, %s982_s16  ;;  %p55_p0 = scmp.ne.s32.totalorder %s929_s14, %s925_s13 }
   0x8   : > { %p46_p1 = scmp.eq.s32.totalorder %s45_s18, 0  ;;  %p56_p2 = scmp.eq.s32.totalorder %s933_s15, 0 }
   0x9   : > { %p743_p3 = scmp.lt.s32.totalorder %s933_s15, 3  ;;  %s148_s20 = sand.u32 1, %s933_s15  }
   0xa   : > { %s992_s19 = scalar_select %p46_p1, %s929_s14, %s48_s17  }
   0xb   : > { %p57_p4 = por %p56_p2, %p55_p0  ;;  %s150_s21 = sand.u32 1, %s929_s14  }
   0xc   : > { %s714_s22 = smul.u32 768, %s150_s21  ;;  %s1013_s30 = scalar_lea.sflag [#allocation6], %s148_s20 }
   0xd   : > { %p1001_p5 = pnand %p743_p3, %p57_p4  ;;  %s715_s24 = smul.u32 12288, %s933_s15 }
   0xe   : > { %s152_s28 = scalar_lea.vmem [#allocation5], %s714_s22  ;;  %s788_s7 = scalar_lea.hbm %s1270_s1, 36864 }
   0xf   : > { %s1009_s27 = scalar_lea.hbm %s1270_s1, %s715_s24  ;;  %s160_s29 = sshll.u32 %s152_s28, 4  ;;  %s1011_s29 = int_to_ptr.vmem [resolvable:$true] %s160_s29 }
  0x10   : > { %s783_s4 = scalar_lea.hbm %s1009_s27, 12288  ;;  %p785_p7 = pneg %p1001_p5 }
  0x11   : > { %p784_p6 = scmp.ne.s32.totalorder %s1009_s27, %s783_s4  ;;  %p789_p10 = scmp.lt.s32.totalorder %s1009_s27, %s1270_s1 }
  0x12   : > { %p790_p11 = scmp.lt.s32.totalorder %s788_s7, %s783_s4 }
  0x13   : > { %p786_p8 = pnand %p785_p7, %p784_p6 }
  0x14   : > { %p791_p12 = por %p790_p11, %p789_p10 }
  0x15   : > { %p787_p9 = pneg %p786_p8 }
  0x17   : > { %p792_p13 = pnand %p791_p12, %p787_p9 }
  0x19   : > { %795 = shalt.err (!%p792_p13)
}
  0x1a   : > { %s796_s10 = scalar_lea.vmem %s1011_s29, 12288  ;;  %s935_s11 = smov [#allocation5]  }
  0x1b   : > { %p797_p1 = scmp.ne.s32.totalorder %s1011_s29, %s796_s10  ;;  %s801_s17 = sshll.u32 %s935_s11, 4  ;;  %s802_s17 = int_to_ptr.vmem [resolvable:$false] %s801_s17 }
  0x1c   : > { %s803_s18 = scalar_lea.vmem %s802_s17, 24576  ;;  %p804_p4 = scmp.lt.s32.totalorder %s1011_s29, %s802_s17 }
  0x1d   : > { %p799_p2 = pnand %p797_p1, %p785_p7  ;;  %p805_p6 = scmp.lt.s32.totalorder %s803_s18, %s796_s10 }
  0x1f   : > { %p800_p3 = pneg %p799_p2  ;;  %p806_p8 = por %p805_p6, %p804_p4 }
  0x21   : > { %p807_p10 = pnand %p806_p8, %p800_p3 }
  0x23   : > { %810 = shalt.err (!%p807_p10)
}
  0x24   : > { %s936_s20 = smov 768   ;;  %s937_s22 = smov 48  }
  0x25   : > { %734 = dma.hbm_to_vmem [thread:$0]  (!%p1001_p5), %s1009_s27, 12288, %s1011_s29, %s1013_s30, %s936_s20, %s936_s20, %s937_s22  }
  0x26   : > { %s1041_s24 = sadd.s32 4294967295, %s933_s15   ;;  %s697_s25 = sadd.s32 4294967294, %s933_s15  }
  0x27   : > { %p61_p9 = scmp.ne.s32.totalorder %s925_s13, %s921_s12  ;;  %p1273_p11 = scmp.eq.s32.totalorder %s1041_s24, 0 }
  0x28   : > { %p111_p12 = scmp.eq.s32.totalorder %s1041_s24, 2  ;;  %p117_p13 = scmp.eq.s32.totalorder %s697_s25, 2 }
  0x29   : > { %p1050_p1 = por %p1273_p11, %p61_p9  ;;  %p698_p2 = scmp.ge.s32.totalorder %s933_s15, 1 }
  0x2a   : > { %p1058_p3 = por %p111_p12, %p55_p0  ;;  %p1062_p4 = por %p117_p13, %p61_p9 }
  0x2b   : > { %s1279_s26 = scalar_select %p1050_p1, 1, 0 }
  0x2c   : > { %s1280_s27 = scalar_select %p1058_p3, 1, 0 }
  0x2d   : > { %s1281_s28 = scalar_select %p1062_p4, 1, 0 }
  0x2e   : > { %p124_p6 = scmp.lt.s32.totalorder %s933_s15, 4  ;;  %s704_s29 = sshll.u32 %s150_s21, 1 }
  0x2f   : > { %s938_s5 = smov [#allocation2]   ;;  %s705_s7 = sshll.u32 %s933_s15, 5 }
  0x30   : > { %p1069_p8 = pnand %p698_p2, %p124_p6  ;;  %s137_s6 = sshll.u32 %s938_s5, 4  ;;  %s1073_s6 = int_to_ptr.vmem [resolvable:$true] %s137_s6 }
  0x31   : > { %s1081_s10 = scalar_lea.hbm %s1271_s2, %s705_s7  ;;  %s174_s21 = scalar_lea.vmem [#allocation7], %s704_s29 }
  0x32   : > { %s1282_s4 = scalar_select %p1069_p8, 1, 0 }
  0x33   : > { %p727_p0 = pneg %p1069_p8  ;;  %s181_s11 = sshll.u32 %s174_s21, 4  ;;  %s182_s11 = int_to_ptr.vmem [resolvable:$true] %s181_s11 }
  0x34   : > { %s811_s18 = scalar_lea.hbm %s1081_s10, 32  ;;  %s816_s25 = scalar_lea.hbm %s1271_s2, 96 }
  0x35   : > { %p1085_p10 = pnand %p727_p0, %p1273_p11  ;;  %p812_p9 = scmp.ne.s32.totalorder %s1081_s10, %s811_s18 }
  0x36   : > { %p817_p2 = scmp.lt.s32.totalorder %s1081_s10, %s1271_s2  ;;  %p818_p6 = scmp.lt.s32.totalorder %s816_s25, %s811_s18 }
  0x37   : > { %s1283_s17 = scalar_select %p1085_p10, 1, 0 }
  0x38   : > { %p814_p12 = pnand %p812_p9, %p785_p7  ;;  %p819_p0 = por %p818_p6, %p817_p2 }
  0x3a   : > { %p815_p13 = pneg %p814_p12 }
  0x3c   : > { %p820_p11 = pnand %p819_p0, %p815_p13 }
  0x3e   : > { %823 = shalt.err (!%p820_p11)
}
  0x3f   : > { %s824_s29 = scalar_lea.vmem %s182_s11, 32  ;;  %s939_s8 = smov [#allocation7]  }
  0x40   : > { %p825_p4 = scmp.ne.s32.totalorder %s182_s11, %s824_s29  ;;  %s829_s9 = sshll.u32 %s939_s8, 4  ;;  %s830_s9 = int_to_ptr.vmem [resolvable:$false] %s829_s9 }
  0x41   : > { %s831_s21 = scalar_lea.vmem %s830_s9, 64  ;;  %p832_p12 = scmp.lt.s32.totalorder %s182_s11, %s830_s9 }
  0x42   : > { %p827_p3 = pnand %p825_p4, %p785_p7  ;;  %p833_p1 = scmp.lt.s32.totalorder %s831_s21, %s824_s29 }
  0x44   : > { %p828_p9 = pneg %p827_p3  ;;  %p834_p8 = por %p833_p1, %p832_p12 }
  0x46   : > { %p835_p10 = pnand %p834_p8, %p828_p9 }
  0x48   : > { %838 = shalt.err (!%p835_p10)
}
  0x49   : > { %737 = dma.hbm_to_vmem [thread:$0]  (!%p1001_p5), %s1081_s10, 32, %s182_s11, %s1013_s30  }
  0x4a   : > { %p1284_p7 = scmp.ne.s32.totalorder %s1283_s17, 0  ;;  %s850_s18 = scalar_lea.vmem %s1073_s6, 768 }
  0x4b   : > { %p851_p3 = scmp.ne.s32.totalorder %s1073_s6, %s850_s18  ;;  %p858_p2 = scmp.lt.s32.totalorder %s1073_s6, %s1073_s6 }
  0x4c   : > { %p841_p11 = pneg %p1284_p7  ;;  %p859_p1 = scmp.lt.s32.totalorder %s850_s18, %s850_s18 }
  0x4e   : > { %p853_p4 = pnand %p851_p3, %p841_p11  ;;  %p860_p8 = por %p859_p1, %p858_p2 }
  0x50   : > { %p854_p13 = pneg %p853_p4 }
  0x52   : > { %p861_p10 = pnand %p860_p8, %p854_p13 }
  0x54   : > { %864 = shalt.err (!%p861_p10)
}
  0x55   : > { %730 = dma.hbm_to_vmem [thread:$0]  (!%p1284_p7), %s1269_s0, 768, %s1073_s6, [#allocation3]  }
  0x56   : > { %p1285_p5 = scmp.ne.s32.totalorder %s1282_s4, 0 }
  0x57   : > { %p1286_p6 = scmp.eq.s32.totalorder (!%p1285_p5), %s1041_s24, 0 }
  0x58   : > { %190 = sbr.rel (%p1285_p5) target bundleno = 492 (0x1ec), region = 32 }
  0x5d   : > { %908 = dma.done.wait (%p1286_p6), [#allocation3], 768   ;;  %p1287_p0 = pmov %p1286_p6 }
  0x5e   : > { %s196_s30 = sand.u32 1, %s1041_s24   ;;  %s1128_s10 = sand.u32 1, %s925_s13  }
  0x5f   : > { %910 = vsyncadd (%p1287_p0), [#allocation3], 4294966528  ;;  %s716_s11 = smul.u32 768, %s1128_s10  ;;  %s197_s17 = scalar_lea.sflag [#allocation6], %s196_s30 }
  0x60   : > { %p1288_p9 = scmp.ne.s32.totalorder %s1279_s26, 0 }
  0x61   : > { %s1131_s22 = scalar_lea.vmem [#allocation5], %s716_s11 }
  0x62   : > { %912 = dma.done.wait (%p1288_p9), %s197_s17, 12320  }
  0x63   : > { %914 = vsyncadd (%p1288_p9), %s197_s17, 4294954976  ;;  %v335_v0 = vld [vmem:[%s1131_s22 + $0x2d8] sm:$0xff]  ;;  %v334_v1 = vld [vmem:[%s1131_s22 + $0x2d0] sm:$0xff]  ;;  %s708_s26 = sshll.u32 %s1128_s10, 1  ;;  %s709_s6 = sshll.u32 %s1128_s10, 3 }
  0x64   : > { %v337_v2 = vld [vmem:[%s1131_s22 + $0x2e8] sm:$0xff]  ;;  %340 = vmatprep.subr.mxu0 %v335_v0  ;;  %v336_v3 = vld [vmem:[%s1131_s22 + $0x2e0] sm:$0xff]  ;;  %v331_v5 = vld [vmem:[%s1131_s22 + $0x2b8] sm:$0xff]  ;;  %s209_s4 = scalar_lea.vmem [#allocation7], %s708_s26  ;;  %s711_s25 = sshll.u32 %s1041_s24, 7 }
  0x65   : > { %410 = vmatprep.subr.mxu1 %v337_v2  ;;  %v329_v4 = vld [vmem:[%s1131_s22 + $0x2a8] sm:$0xff]  ;;  %341 = vmatpush1.xpose.msra.mxu0 %v334_v1  ;;  %v328_v6 = vld [vmem:[%s1131_s22 + $0x2a0] sm:$0xff]  ;;  %v330_v7 = vld [vmem:[%s1131_s22 + $0x2b0] sm:$0xff]  ;;  %s236_s5 = scalar_lea.vmem [#allocation8], %s709_s6  ;;  %s593_s9 = scalar_lea.hbm %s1272_s3, %s711_s25 }
  0x66   : > { %411 = vmatpush1.xpose.msra.mxu1 %v336_v3  ;;  %342 = vmatprep.subr.mxu0 %v329_v4  ;;  %v323_v8 = vld [vmem:[%s1131_s22 + $0x278] sm:$0xff]  ;;  %v325_v9 = vld [vmem:[%s1131_s22 + $0x288] sm:$0xff]  ;;  %v322_v10 = vld [vmem:[%s1131_s22 + $0x270] sm:$0xff]  ;;  %s595_s7 = sshll.u32 %s236_s5, 4  ;;  %s582_s21 = scalar_lea.sflag [#allocation4], %s1128_s10  ;;  %s596_s7 = int_to_ptr.vmem [resolvable:$true] %s595_s7 }
  0x67   : > { %412 = vmatprep.subr.mxu1 %v331_v5  ;;  %v324_v11 = vld [vmem:[%s1131_s22 + $0x280] sm:$0xff]  ;;  %v317_v12 = vld [vmem:[%s1131_s22 + $0x248] sm:$0xff]  ;;  %v319_v13 = vld [vmem:[%s1131_s22 + $0x258] sm:$0xff]  ;;  %s865_s18 = scalar_lea.vmem %s596_s7, 128  ;;  %p1289_p7 = scmp.ne.s32.totalorder %s1280_s27, 0 }
  0x68   : > { %v316_v14 = vld [vmem:[%s1131_s22 + $0x240] sm:$0xff]  ;;  %v318_v15 = vld [vmem:[%s1131_s22 + $0x250] sm:$0xff]  ;;  %v311_v16 = vld [vmem:[%s1131_s22 + $0x218] sm:$0xff]  ;;  %p866_p12 = scmp.ne.s32.totalorder %s596_s7, %s865_s18  ;;  %s940_s23 = smov [#allocation8]  }
  0x69   : > { %343 = vmatpush1.xpose.msra.mxu0 %v328_v6  ;;  %v313_v17 = vld [vmem:[%s1131_s22 + $0x228] sm:$0xff]  ;;  %v310_v18 = vld [vmem:[%s1131_s22 + $0x210] sm:$0xff]  ;;  %v312_v19 = vld [vmem:[%s1131_s22 + $0x220] sm:$0xff]  ;;  %s869_s20 = sshll.u32 %s940_s23, 4  ;;  %s870_s20 = int_to_ptr.vmem [resolvable:$false] %s869_s20 }
  0x6a   : > { %413 = vmatpush1.xpose.msra.mxu1 %v330_v7  ;;  %344 = vmatprep.subr.mxu0 %v323_v8  ;;  %v305_v20 = vld [vmem:[%s1131_s22 + $0x1e8] sm:$0xff]  ;;  %v307_v21 = vld [vmem:[%s1131_s22 + $0x1f8] sm:$0xff]  ;;  %v304_v22 = vld [vmem:[%s1131_s22 + $0x1e0] sm:$0xff]  ;;  %p867_p11 = pnand %p866_p12, %p1289_p7  ;;  %s871_s24 = scalar_lea.vmem %s870_s20, 256 }
  0x6b   : > { %414 = vmatprep.subr.mxu1 %v325_v9  ;;  %v306_v23 = vld [vmem:[%s1131_s22 + $0x1f0] sm:$0xff]  ;;  %v299_v24 = vld [vmem:[%s1131_s22 + $0x1b8] sm:$0xff]  ;;  %v301_v25 = vld [vmem:[%s1131_s22 + $0x1c8] sm:$0xff]  ;;  %p872_p4 = scmp.lt.s32.totalorder %s596_s7, %s870_s20  ;;  %p873_p13 = scmp.lt.s32.totalorder %s871_s24, %s865_s18 }
  0x6c   : > { %v239_v26 = vld [vmem:[#allocation2 + $0x8] sm:$0xff]  ;;  %v241_v27 = vld [vmem:[#allocation2 + $0x18] sm:$0xff]  ;;  %v298_v28 = vld [vmem:[%s1131_s22 + $0x1b0] sm:$0xff]  ;;  %p868_p3 = pneg %p867_p11 }
  0x6d   : > { %345 = vmatpush1.xpose.msra.mxu0 %v322_v10  ;;  %v300_v29 = vld [vmem:[%s1131_s22 + $0x1c0] sm:$0xff]  ;;  %v293_v30 = vld [vmem:[%s1131_s22 + $0x188] sm:$0xff]  ;;  %v295_v31 = vld [vmem:[%s1131_s22 + $0x198] sm:$0xff]  ;;  %404 = vmatprep.mubr.f32.mxu0 %v239_v26  ;;  %p874_p2 = por %p873_p13, %p872_p4 }
  0x6e   : > { %415 = vmatpush1.xpose.msra.mxu1 %v324_v11  ;;  %346 = vmatprep.subr.mxu0 %v317_v12  ;;  %v292_v32 = vld [vmem:[%s1131_s22 + $0x180] sm:$0xff]  ;;  %v294_v33 = vld [vmem:[%s1131_s22 + $0x190] sm:$0xff]  ;;  %v287_v34 = vld [vmem:[%s1131_s22 + $0x158] sm:$0xff] }
  0x6f   : > { %416 = vmatprep.subr.mxu1 %v319_v13  ;;  %474 = vmatprep.mubr.f32.mxu1 %v241_v27  ;;  %v289_v35 = vld [vmem:[%s1131_s22 + $0x168] sm:$0xff]  ;;  %v286_v36 = vld [vmem:[%s1131_s22 + $0x150] sm:$0xff]  ;;  %v288_v37 = vld [vmem:[%s1131_s22 + $0x160] sm:$0xff]  ;;  %p875_p1 = pnand %p874_p2, %p868_p3 }
  0x70   : > { %v281_v38 = vld [vmem:[%s1131_s22 + $0x128] sm:$0xff]  ;;  %v283_v39 = vld [vmem:[%s1131_s22 + $0x138] sm:$0xff]  ;;  %v280_v40 = vld [vmem:[%s1131_s22 + $0x120] sm:$0xff] }
  0x71   : > { %347 = vmatpush1.xpose.msra.mxu0 %v316_v14  ;;  %v282_v41 = vld [vmem:[%s1131_s22 + $0x130] sm:$0xff]  ;;  %v275_v42 = vld [vmem:[%s1131_s22 + $0xf8] sm:$0xff]  ;;  %v277_v43 = vld [vmem:[%s1131_s22 + $0x108] sm:$0xff] }
  0x72   : > { %417 = vmatpush1.xpose.msra.mxu1 %v318_v15  ;;  %348 = vmatprep.subr.mxu0 %v311_v16  ;;  %v274_v44 = vld [vmem:[%s1131_s22 + $0xf0] sm:$0xff]  ;;  %v276_v45 = vld [vmem:[%s1131_s22 + $0x100] sm:$0xff]  ;;  %v269_v46 = vld [vmem:[%s1131_s22 + $0xc8] sm:$0xff] }
  0x73   : > { %418 = vmatprep.subr.mxu1 %v313_v17  ;;  %v271_v47 = vld [vmem:[%s1131_s22 + $0xd8] sm:$0xff]  ;;  %v268_v48 = vld [vmem:[%s1131_s22 + $0xc0] sm:$0xff]  ;;  %v270_v49 = vld [vmem:[%s1131_s22 + $0xd0] sm:$0xff] }
  0x74   : > { %v263_v50 = vld [vmem:[%s1131_s22 + $0x98] sm:$0xff]  ;;  %v265_v51 = vld [vmem:[%s1131_s22 + $0xa8] sm:$0xff]  ;;  %v262_v52 = vld [vmem:[%s1131_s22 + $0x90] sm:$0xff] }
  0x75   : > { %349 = vmatpush1.xpose.msra.mxu0 %v310_v18  ;;  %v264_v53 = vld [vmem:[%s1131_s22 + $0xa0] sm:$0xff]  ;;  %v257_v54 = vld [vmem:[%s1131_s22 + $0x68] sm:$0xff]  ;;  %v259_v55 = vld [vmem:[%s1131_s22 + $0x78] sm:$0xff] }
  0x76   : > { %419 = vmatpush1.xpose.msra.mxu1 %v312_v19  ;;  %350 = vmatprep.subr.mxu0 %v305_v20  ;;  %v256_v56 = vld [vmem:[%s1131_s22 + $0x60] sm:$0xff]  ;;  %v258_v57 = vld [vmem:[%s1131_s22 + $0x70] sm:$0xff]  ;;  %v251_v58 = vld [vmem:[%s1131_s22 + $0x38] sm:$0xff] }
  0x77   : > { %420 = vmatprep.subr.mxu1 %v307_v21  ;;  %v253_v59 = vld [vmem:[%s1131_s22 + $0x48] sm:$0xff]  ;;  %v250_v60 = vld [vmem:[%s1131_s22 + $0x30] sm:$0xff]  ;;  %v252_v61 = vld [vmem:[%s1131_s22 + $0x40] sm:$0xff] }
  0x78   : > { %v245_v62 = vld [vmem:[%s1131_s22 + $0x8] sm:$0xff]  ;;  %v247_v63 = vld [vmem:[%s1131_s22 + $0x18] sm:$0xff]  ;;  %v244_v0 = vld [vmem:[%s1131_s22] sm:$0xff] }
  0x79   : > { %351 = vmatpush1.xpose.msra.mxu0 %v304_v22  ;;  %v246_v1 = vld [vmem:[%s1131_s22 + $0x10] sm:$0xff]  ;;  %v339_v2 = vld [vmem:[%s1131_s22 + $0x2f8] sm:$0xff]  ;;  %v240_v4 = vld [vmem:[#allocation2 + $0x10] sm:$0xff] }
  0x7a   : > { %421 = vmatpush1.xpose.msra.mxu1 %v306_v23  ;;  %352 = vmatprep.subr.mxu0 %v299_v24  ;;  %v238_v3 = vld [vmem:[#allocation2] sm:$0xff]  ;;  %v243_v6 = vld [vmem:[#allocation2 + $0x28] sm:$0xff]  ;;  %v333_v7 = vld [vmem:[%s1131_s22 + $0x2c8] sm:$0xff] }
  0x7b   : > { %422 = vmatprep.subr.mxu1 %v301_v25  ;;  %v338_v5 = vld [vmem:[%s1131_s22 + $0x2f0] sm:$0xff]  ;;  %v332_v8 = vld [vmem:[%s1131_s22 + $0x2c0] sm:$0xff]  ;;  %v327_v9 = vld [vmem:[%s1131_s22 + $0x298] sm:$0xff] }
  0x7c   : > { %v326_v10 = vld [vmem:[%s1131_s22 + $0x290] sm:$0xff]  ;;  %v321_v11 = vld [vmem:[%s1131_s22 + $0x268] sm:$0xff]  ;;  %v320_v12 = vld [vmem:[%s1131_s22 + $0x260] sm:$0xff] }
  0x7d   : > { %353 = vmatpush1.xpose.msra.mxu0 %v298_v28  ;;  %v315_v13 = vld [vmem:[%s1131_s22 + $0x238] sm:$0xff]  ;;  %v314_v14 = vld [vmem:[%s1131_s22 + $0x230] sm:$0xff]  ;;  %v309_v15 = vld [vmem:[%s1131_s22 + $0x208] sm:$0xff] }
  0x7e   : > { %423 = vmatpush1.xpose.msra.mxu1 %v300_v29  ;;  %354 = vmatprep.subr.mxu0 %v293_v30  ;;  %v308_v16 = vld [vmem:[%s1131_s22 + $0x200] sm:$0xff]  ;;  %v303_v17 = vld [vmem:[%s1131_s22 + $0x1d8] sm:$0xff]  ;;  %v302_v18 = vld [vmem:[%s1131_s22 + $0x1d0] sm:$0xff] }
  0x7f   : > { %424 = vmatprep.subr.mxu1 %v295_v31  ;;  %v297_v19 = vld [vmem:[%s1131_s22 + $0x1a8] sm:$0xff]  ;;  %v296_v20 = vld [vmem:[%s1131_s22 + $0x1a0] sm:$0xff]  ;;  %v291_v21 = vld [vmem:[%s1131_s22 + $0x178] sm:$0xff] }
  0x80   : > { %v290_v22 = vld [vmem:[%s1131_s22 + $0x170] sm:$0xff]  ;;  %v285_v23 = vld [vmem:[%s1131_s22 + $0x148] sm:$0xff]  ;;  %v284_v24 = vld [vmem:[%s1131_s22 + $0x140] sm:$0xff] }
  0x81   : > { %355 = vmatpush1.xpose.msra.mxu0 %v292_v32  ;;  %v279_v25 = vld [vmem:[%s1131_s22 + $0x118] sm:$0xff]  ;;  %v278_v26 = vld [vmem:[%s1131_s22 + $0x110] sm:$0xff]  ;;  %v273_v27 = vld [vmem:[%s1131_s22 + $0xe8] sm:$0xff] }
  0x82   : > { %425 = vmatpush1.xpose.msra.mxu1 %v294_v33  ;;  %356 = vmatprep.subr.mxu0 %v287_v34  ;;  %v272_v28 = vld [vmem:[%s1131_s22 + $0xe0] sm:$0xff]  ;;  %v267_v29 = vld [vmem:[%s1131_s22 + $0xb8] sm:$0xff]  ;;  %v266_v30 = vld [vmem:[%s1131_s22 + $0xb0] sm:$0xff] }
  0x83   : > { %426 = vmatprep.subr.mxu1 %v289_v35  ;;  %v261_v31 = vld [vmem:[%s1131_s22 + $0x88] sm:$0xff]  ;;  %v260_v32 = vld [vmem:[%s1131_s22 + $0x80] sm:$0xff]  ;;  %v255_v33 = vld [vmem:[%s1131_s22 + $0x58] sm:$0xff] }
  0x84   : > { %v254_v34 = vld [vmem:[%s1131_s22 + $0x50] sm:$0xff]  ;;  %v249_v35 = vld [vmem:[%s1131_s22 + $0x28] sm:$0xff] }
  0x85   : > { %357 = vmatpush1.xpose.msra.mxu0 %v286_v36  ;;  %v248_v36 = vld [vmem:[%s1131_s22 + $0x20] sm:$0xff] }
  0x86   : > { %427 = vmatpush1.xpose.msra.mxu1 %v288_v37  ;;  %358 = vmatprep.subr.mxu0 %v281_v38  ;;  %v242_v37 = vld [vmem:[#allocation2 + $0x20] sm:$0xff] }
  0x87   : > { %428 = vmatprep.subr.mxu1 %v283_v39 }
  0x89   : > { %359 = vmatpush1.xpose.msra.mxu0 %v280_v40 }
  0x8a   : > { %429 = vmatpush1.xpose.msra.mxu1 %v282_v41  ;;  %360 = vmatprep.subr.mxu0 %v275_v42 }
  0x8b   : > { %430 = vmatprep.subr.mxu1 %v277_v43 }
  0x8d   : > { %361 = vmatpush1.xpose.msra.mxu0 %v274_v44 }
  0x8e   : > { %431 = vmatpush1.xpose.msra.mxu1 %v276_v45  ;;  %362 = vmatprep.subr.mxu0 %v269_v46 }
  0x8f   : > { %432 = vmatprep.subr.mxu1 %v271_v47 }
  0x91   : > { %363 = vmatpush1.xpose.msra.mxu0 %v268_v48 }
  0x92   : > { %433 = vmatpush1.xpose.msra.mxu1 %v270_v49  ;;  %364 = vmatprep.subr.mxu0 %v263_v50 }
  0x93   : > { %434 = vmatprep.subr.mxu1 %v265_v51 }
  0x95   : > { %365 = vmatpush1.xpose.msra.mxu0 %v262_v52 }
  0x96   : > { %435 = vmatpush1.xpose.msra.mxu1 %v264_v53  ;;  %366 = vmatprep.subr.mxu0 %v257_v54 }
  0x97   : > { %436 = vmatprep.subr.mxu1 %v259_v55 }
  0x99   : > { %367 = vmatpush1.xpose.msra.mxu0 %v256_v56 }
  0x9a   : > { %437 = vmatpush1.xpose.msra.mxu1 %v258_v57  ;;  %368 = vmatprep.subr.mxu0 %v251_v58 }
  0x9b   : > { %438 = vmatprep.subr.mxu1 %v253_v59 }
  0x9d   : > { %369 = vmatpush1.xpose.msra.mxu0 %v250_v60 }
  0x9e   : > { %439 = vmatpush1.xpose.msra.mxu1 %v252_v61  ;;  %370 = vmatprep.subr.mxu0 %v245_v62 }
  0x9f   : > { %440 = vmatprep.subr.mxu1 %v247_v63  ;;  %v570_v63 = vlaneseq }
  0xa1   : > { %371 = vmatpush1.xpose.msra.mxu0 %v244_v0  ;;  %v571_v0 = vshrl.u32 %v570_v63, 7 }
  0xa2   : > { %441 = vmatpush1.xpose.msra.mxu1 %v246_v1  ;;  %480 = vmatprep.subr.mxu0 %v339_v2  ;;  %v550_v1 = vld [vmem:[%s209_s4] sm:$0x3] }
  0xa3   : > { %v572_v2 = vsub.s32 0, %v571_v0 }
  0xa4   : > { %405 = vmatmul.mubr.f32.vlgmr.msra.gmra.mxu0 %v238_v3  ;;  %v577_v3 = vsub.s32 1, %v571_v0 }
  0xa5   : > { %475 = vmatmul.mubr.f32.vlgmr.msra.gmra.mxu1 %v240_v4  ;;  %481 = vmatpush1.xpose.msra.mxu0 %v338_v5 }
  0xa6   : > { %544 = vmatprep.mubr.f32.mxu0 %v243_v6  ;;  %482 = vmatprep.subr.mxu0 %v333_v7  ;;  %v578_v7 = vrot.slane %v550_v1, %v577_v3 }
  0xa9   : > { %483 = vmatpush1.xpose.msra.mxu0 %v332_v8 }
  0xaa   : > { %484 = vmatprep.subr.mxu0 %v327_v9 }
  0xad   : > { %485 = vmatpush1.xpose.msra.mxu0 %v326_v10 }
  0xae   : > { %486 = vmatprep.subr.mxu0 %v321_v11 }
  0xb1   : > { %487 = vmatpush1.xpose.msra.mxu0 %v320_v12 }
  0xb2   : > { %488 = vmatprep.subr.mxu0 %v315_v13 }
  0xb5   : > { %489 = vmatpush1.xpose.msra.mxu0 %v314_v14 }
  0xb6   : > { %490 = vmatprep.subr.mxu0 %v309_v15 }
  0xb9   : > { %491 = vmatpush1.xpose.msra.mxu0 %v308_v16 }
  0xba   : > { %492 = vmatprep.subr.mxu0 %v303_v17 }
  0xbd   : > { %493 = vmatpush1.xpose.msra.mxu0 %v302_v18 }
  0xbe   : > { %494 = vmatprep.subr.mxu0 %v297_v19 }
  0xc1   : > { %495 = vmatpush1.xpose.msra.mxu0 %v296_v20 }
  0xc2   : > { %496 = vmatprep.subr.mxu0 %v291_v21 }
  0xc5   : > { %497 = vmatpush1.xpose.msra.mxu0 %v290_v22 }
  0xc6   : > { %498 = vmatprep.subr.mxu0 %v285_v23 }
  0xc9   : > { %499 = vmatpush1.xpose.msra.mxu0 %v284_v24 }
  0xca   : > { %500 = vmatprep.subr.mxu0 %v279_v25 }
  0xcd   : > { %501 = vmatpush1.xpose.msra.mxu0 %v278_v26 }
  0xce   : > { %502 = vmatprep.subr.mxu0 %v273_v27 }
  0xd1   : > { %503 = vmatpush1.xpose.msra.mxu0 %v272_v28 }
  0xd2   : > { %504 = vmatprep.subr.mxu0 %v267_v29 }
  0xd5   : > { %505 = vmatpush1.xpose.msra.mxu0 %v266_v30 }
  0xd6   : > { %506 = vmatprep.subr.mxu0 %v261_v31 }
  0xd9   : > { %507 = vmatpush1.xpose.msra.mxu0 %v260_v32 }
  0xda   : > { %508 = vmatprep.subr.mxu0 %v255_v33 }
  0xdd   : > { %509 = vmatpush1.xpose.msra.mxu0 %v254_v34 }
  0xde   : > { %510 = vmatprep.subr.mxu0 %v249_v35 }
  0xe1   : > { %511 = vmatpush1.xpose.msra.mxu0 %v248_v36 }
  0xe4   : > { %545 = vmatmul.mubr.f32.vlgmr.msra.gmra.mxu0 %v242_v37 }
 0x164   : > { %v406_v38 = vpop.f32.mrf.mxu0 }
 0x165   : > { %v476_v39 = vpop.f32.mrf.mxu1 }
 0x166   : > { %v408_v40 = vpop.f32.mrf.mxu0  ;;  %v477_v42 = vadd.f32 %v476_v39, %v406_v38 }
 0x167   : > { %v478_v41 = vpop.f32.mrf.mxu1 }
 0x1a4   : > { %v546_v43 = vpop.f32.mrf.mxu0 }
 0x1a5   : > { %v547_v44 = vadd.f32 %v546_v43, %v477_v42 }
 0x1a6   : > { %v548_v45 = vpop.f32.mrf.mxu0 }
 0x1a7   : > { %v551_v46 = vrot.slane %v547_v44, 4 }
 0x1a9   : > { %v552_v47 = vadd.f32 %v551_v46, %v547_v44 }
 0x1ab   : > { %v553_v48 = vrot.slane %v552_v47, 2 }
 0x1ad   : > { %v554_v49 = vadd.f32 %v553_v48, %v552_v47 }
 0x1af   : > { %v555_v50 = vrot.slane %v554_v49, 1 }
 0x1b1   : > { %v556_v51 = vadd.f32 %v555_v50, %v554_v49 }
 0x1b3   : > { %v557_v52 = vmul.f32 0.125, %v556_v51 }
 0x1b5   : > { %v558_v53 = vsub.f32 %v547_v44, %v557_v52 }
 0x1b7   : > { %v559_v54 = vmul.f32 %v558_v53, %v558_v53 }
 0x1b9   : > { %v560_v55 = vrot.slane %v559_v54, 4 }
 0x1bb   : > { %v561_v56 = vadd.f32 %v560_v55, %v559_v54 }
 0x1bd   : > { %v562_v57 = vrot.slane %v561_v56, 2 }
 0x1bf   : > { %v563_v58 = vadd.f32 %v562_v57, %v561_v56 }
 0x1c1   : > { %v564_v59 = vrot.slane %v563_v58, 1 }
 0x1c3   : > { %v565_v60 = vadd.f32 %v564_v59, %v563_v58 }
 0x1c5   : > { %v566_v61 = vmul.f32 0.125, %v565_v60 }
 0x1c7   : > { %v567_v62 = vadd.f32 1e-05, %v566_v61 }
 0x1c9   : > { %781 = vrsqrt.f32 %v567_v62 }
 0x1d6   : > { %v782_v4 = vpop.eup %781 }
 0x1d7   : > { %v569_v5 = vmul.f32 %v782_v4, %v550_v1 }
 0x1d9   : > { %v573_v6 = vrot.slane %v569_v5, %v572_v2 }
 0x1db   : > { %v574_v8 = vmul.f32 %v573_v6, %v558_v53 }
 0x1dd   : > { %v579_v9 = vadd.f32 %v578_v7, %v574_v8 }
 0x1df   : > { %580 = vst [vmem:[%s236_s5] sm:$0xff] %v579_v9 }
 0x1e0   : > { %878 = shalt.err (!%p875_p1)
}
 0x1e1   : > { %s879_s30 = scalar_lea.hbm %s593_s9, 128  ;;  %s883_s17 = scalar_lea.hbm %s1272_s3, 384 }
 0x1e2   : > { %p880_p8 = scmp.ne.s32.totalorder %s593_s9, %s879_s30  ;;  %p884_p6 = scmp.lt.s32.totalorder %s593_s9, %s1272_s3 }
 0x1e3   : > { %p885_p0 = scmp.lt.s32.totalorder %s883_s17, %s879_s30 }
 0x1e4   : > { %p881_p10 = pnand %p880_p8, %p1289_p7 }
 0x1e5   : > { %p886_p9 = por %p885_p0, %p884_p6 }
 0x1e6   : > { %p882_p5 = pneg %p881_p10 }
 0x1e8   : > { %p887_p12 = pnand %p886_p9, %p882_p5 }
 0x1ea   : > { %890 = shalt.err (!%p887_p12)
}
 0x1eb   : > { %725 = dma.vmem_to_hbm [thread:$0]  (%p1289_p7), %s596_s7, 128, %s593_s9, %s582_s21  }
 0x1ec PF: > { %p745_p11 = scmp.ge.s32.totalorder %s933_s15, 2  ;;  %s607_s4 = sand.u32 1, %s921_s12  }
 0x1ed   : > { %p1290_p3 = scmp.ne.s32.totalorder %s1281_s28, 0  ;;  %s608_s6 = scalar_lea.sflag [#allocation4], %s607_s4 }
 0x1ef   : > { %p739_p4 = pnand %p745_p11, %p1290_p3 }
 0x1f1   : > { %p740_p13 = pneg %p739_p4 }
 0x1f3   : > { %916 = dma.done.wait (%p740_p13), %s608_s6, 128  }
 0x1f4   : > { %918 = vsyncadd (%p740_p13), %s608_s6, 4294967168  ;;  %p17_p2 = scmp.ge.s32.totalorder %s982_s16, 5   ;;  %s1291_s12 = smov %s925_s13 }
 0x1f5   : > { %s1292_s13 = smov %s929_s14  ;;  %s1293_s14 = smov %s992_s19 }
 0x1f6   : > { %s1294_s15 = smov %s982_s16  ;;  %19 = sbr.rel (!%p17_p2) target bundleno = 6 (0x6), region = 93 }
 0x1fb   :  { %613 = vsyncpa [#allocation3], 1 }
 0x1fc   :  { %615 = vsyncpa [#allocation3 + $0x1], 1 }
 0x1fd   :  { %616 = vsyncpa [#allocation6], 1 }
 0x1fe   :  { %618 = vsyncpa [#allocation6 + $0x1], 1 }
 0x1ff   :  { %619 = vsyncpa [#allocation4], 1 }
 0x200   :  { %621 = vsyncpa [#allocation4 + $0x1], 1 }

</bundles_post_ra>
